<compile_context>
chip_gen: v7x
topology: tpu7x:2x2x1
jax: 0.10.0
libtpu: 0.0.40
codegen_flags: <defaults>
</compile_context>

<pallas_src>
import functools

import jax
import jax.numpy as jnp
import numpy as np
from jax.experimental import pallas as pl
from jax.experimental.pallas import tpu as pltpu


def _cdiv(a, b):
    return (a + b - 1) // b


def _round_up(x, m):
    return ((x + m - 1) // m) * m


# ----------------------------------------------------------------------------
# Feature-major kernel (D < 128): rows of z live on the lane axis.
#   z_ref   : (D, tm)        cb_ref : (n_cb, K, D)    cbt_ref : (n_cb, D, K)
#   csq_ref : (n_cb, K, 1)   quant_ref : (D, tm)      ind_ref : (n_cb, tm)
#   loss_ref: (1, 1) per-tile partial sum of ||z_q - r||^2 over valid lanes.
# ----------------------------------------------------------------------------
def _rq_kernel_fm(z_ref, cb_ref, cbt_ref, csq_ref, quant_ref, ind_ref, loss_ref,
                  *, n_codebook, k, tm, m_valid, mask_cols):
    residual = z_ref[...].astype(jnp.float32)                     # (D, tm)
    quant_sum = jnp.zeros_like(residual)
    # carried squared norm of the residual, one value per row (lane)
    r_norm = jnp.sum(residual * residual, axis=0, keepdims=True)  # (1, tm)
    loss_vec = jnp.zeros_like(r_norm)

    for cb in range(n_codebook):
        c = cb_ref[cb]        # (K, D)
        c_t = cbt_ref[cb]     # (D, K)
        c_sq = csq_ref[cb]    # (K, 1)

        # dist[k, m] = ||c_k||^2 - 2 c_k . r_m   (per-row ||r||^2 dropped:
        # constant along the reduced axis -> argmin unchanged).
        cross = jnp.dot(c, residual, preferred_element_type=jnp.float32)  # (K, tm)
        dist = c_sq - 2.0 * cross                                         # (K, tm)

        # argmin over codes (sublane axis); first occurrence on ties, matching
        # torch.min.  Index encoded in f32 (exact for K < 2^24).
        min_d = jnp.min(dist, axis=0, keepdims=True)                      # (1, tm)
        iota = jax.lax.broadcasted_iota(jnp.int32, dist.shape, 0)
        iota_f = iota.astype(jnp.float32)
        ind_f = jnp.min(jnp.where(dist == min_d, iota_f, jnp.float32(k)),
                        axis=0, keepdims=True)                            # (1, tm)

        # lane-dense direct store of this codebook's index row
        ind_ref[cb:cb + 1, :] = ind_f.astype(jnp.int32)

        # exact embedding lookup via one-hot matmul on the MXU
        onehot = (iota_f == ind_f).astype(jnp.float32)                    # (K, tm)
        z_q = jnp.dot(c_t, onehot, preferred_element_type=jnp.float32)    # (D, tm)

        # ||z_q - r||^2 = ||r||^2 + (||z_q||^2 - 2 r.z_q) = r_norm + min_d
        sq = jnp.maximum(r_norm + min_d, 0.0)
        loss_vec = loss_vec + sq
        r_norm = sq                       # next residual's squared norm
        residual = residual - z_q
        quant_sum = quant_sum + z_q       # straight-through value == z_q

    quant_ref[...] = quant_sum.astype(quant_ref.dtype)

    if mask_cols:
        # lanes past m_valid in the last (partial) tile hold garbage -> exclude
        col = (pl.program_id(0) * tm
               + jax.lax.broadcasted_iota(jnp.int32, (1, tm), 1))
        loss_vec = jnp.where(col < m_valid, loss_vec, 0.0)
    loss_ref[...] = jnp.sum(loss_vec, axis=1, keepdims=True)


# ----------------------------------------------------------------------------
# Row-major kernel (D >= 128): rows of z live on the sublane axis.
#   z_ref   : (tm, D)        csq_ref : (n_cb, 1, K)
#   quant_ref : (tm, D)      ind_ref : (tm, n_cb)     loss_ref : (1, 1)
# ----------------------------------------------------------------------------
def _rq_kernel_rm(z_ref, cb_ref, cbt_ref, csq_ref, quant_ref, ind_ref, loss_ref,
                  *, n_codebook, k, tm, m_valid, mask_rows):
    residual = z_ref[...].astype(jnp.float32)                      # (tm, D)
    quant_sum = jnp.zeros_like(residual)
    r_norm = jnp.sum(residual * residual, axis=-1, keepdims=True)  # (tm, 1)
    loss_vec = jnp.zeros_like(r_norm)

    for cb in range(n_codebook):
        c = cb_ref[cb]        # (K, D)
        c_t = cbt_ref[cb]     # (D, K)
        c_sq = csq_ref[cb]    # (1, K)

        cross = jnp.dot(residual, c_t, preferred_element_type=jnp.float32)  # (tm, K)
        dist = c_sq - 2.0 * cross

        min_d = jnp.min(dist, axis=-1, keepdims=True)                       # (tm, 1)
        iota = jax.lax.broadcasted_iota(jnp.int32, dist.shape, 1)
        iota_f = iota.astype(jnp.float32)
        ind_f = jnp.min(jnp.where(dist == min_d, iota_f, jnp.float32(k)),
                        axis=-1, keepdims=True)                             # (tm, 1)

        ind_ref[:, cb:cb + 1] = ind_f.astype(jnp.int32)

        onehot = (iota_f == ind_f).astype(jnp.float32)                      # (tm, K)
        z_q = jnp.dot(onehot, c, preferred_element_type=jnp.float32)        # (tm, D)

        sq = jnp.maximum(r_norm + min_d, 0.0)
        loss_vec = loss_vec + sq
        r_norm = sq
        residual = residual - z_q
        quant_sum = quant_sum + z_q

    quant_ref[...] = quant_sum.astype(quant_ref.dtype)

    if mask_rows:
        row = (pl.program_id(0) * tm
               + jax.lax.broadcasted_iota(jnp.int32, (tm, 1), 0))
        loss_vec = jnp.where(row < m_valid, loss_vec, 0.0)
    loss_ref[...] = jnp.sum(loss_vec, axis=0, keepdims=True)


def _choose_tile(M, D, n_cb, K, tile_budget_bytes=8 << 20):
    """Row-tile size from a VMEM budget; >= 2 tiles whenever M > 128."""
    if M <= 128:
        return M, 1  # single full-extent tile
    per_row = 4 * (2 * 2 * D      # z in + quant out, double-buffered
                   + 2 * n_cb     # ind out, double-buffered
                   + 3 * K        # dist / onehot / iota temporaries
                   + 2 * D)       # residual + quant_sum live values
    tm_cap = max(256, min(2048, (tile_budget_bytes // per_row) // 256 * 256))
    tm = min(tm_cap, _round_up(_cdiv(M, 2), 128))   # >= 2 grid steps for megacore
    return tm, _cdiv(M, tm)


def rq_forward(z, codebooks):
    """RQ forward.  z: (B, N, D) f32, codebooks: (n_codebook, K, D) f32."""
    B, N, D = z.shape
    n_cb, K, _ = codebooks.shape
    M = B * N

    feature_major = D < 128
    tm, num_tiles = _choose_tile(M, D, n_cb, K)
    mask = (num_tiles * tm) != M   # last tile is partial -> mask loss

    cb = codebooks.astype(jnp.float32)            # (n_cb, K, D)
    cb_t = jnp.transpose(cb, (0, 2, 1))           # (n_cb, D, K) hoisted transpose
    c_sq = jnp.sum(cb * cb, axis=-1)              # (n_cb, K) hoisted ||c||^2

    common = dict(n_codebook=n_cb, k=K, tm=tm, m_valid=M)

    # Explicit VMEM budget: double-buffered streaming blocks + resident constants
    # + generous allowance for in-kernel temporaries.
    block_bytes = 2 * 4 * (2 * tm * D + tm * n_cb)
    const_bytes = 2 * 4 * (2 * n_cb * K * D + n_cb * K)
    scratch_allow = 4 * tm * (6 * K + 6 * D) + (4 << 20)
    vmem_limit = int(min(128 << 20,
                         max(block_bytes + const_bytes + scratch_allow, 16 << 20)))
    cparams = pltpu.CompilerParams(
        dimension_semantics=("parallel",),   # no cross-tile carry
        vmem_limit_bytes=vmem_limit,
    )

    if feature_major:
        # Rows on the lane axis: every VPU op, MXU output and store is lane-dense.
        z_t = z.reshape(M, D).astype(jnp.float32).T   # (D, M)
        kernel = functools.partial(_rq_kernel_fm, mask_cols=mask, **common)
        quant_t, ind_cm, loss_part = pl.pallas_call(
            kernel,
            out_shape=(
                jax.ShapeDtypeStruct((D, M), jnp.float32),       # quant (feature-major)
                jax.ShapeDtypeStruct((n_cb, M), jnp.int32),      # indices (lane-dense)
                jax.ShapeDtypeStruct((num_tiles, 1), jnp.float32),
            ),
            grid_spec=pltpu.PrefetchScalarGridSpec(
                num_scalar_prefetch=0,
                grid=(num_tiles,),
                in_specs=[
                    pl.BlockSpec((D, tm), lambda i: (0, i)),
                    # TODO(synk): pipeline_mode=pl.Buffered(1) would single-buffer these
                    # grid-invariant inputs (halves resident codebook VMEM on v7x);
                    # left at the default buffering for portability.
                    pl.BlockSpec((n_cb, K, D), lambda i: (0, 0, 0)),
                    pl.BlockSpec((n_cb, D, K), lambda i: (0, 0, 0)),
                    pl.BlockSpec((n_cb, K, 1), lambda i: (0, 0, 0)),
                ],
                out_specs=[
                    pl.BlockSpec((D, tm), lambda i: (0, i)),
                    pl.BlockSpec((n_cb, tm), lambda i: (0, i)),
                    pl.BlockSpec((1, 1), lambda i: (i, 0)),
                ],
            ),
            compiler_params=cparams,
        )(z_t, cb, cb_t, c_sq[:, :, None])
        quant = quant_t.T.reshape(B, N, D)
        ind = ind_cm.reshape(n_cb, B, N).transpose(1, 0, 2)
    else:
        z_flat = z.reshape(M, D).astype(jnp.float32)
        kernel = functools.partial(_rq_kernel_rm, mask_rows=mask, **common)
        quant_flat, ind_rm, loss_part = pl.pallas_call(
            kernel,
            out_shape=(
                jax.ShapeDtypeStruct((M, D), jnp.float32),
                jax.ShapeDtypeStruct((M, n_cb), jnp.int32),
                jax.ShapeDtypeStruct((num_tiles, 1), jnp.float32),
            ),
            grid_spec=pltpu.PrefetchScalarGridSpec(
                num_scalar_prefetch=0,
                grid=(num_tiles,),
                in_specs=[
                    pl.BlockSpec((tm, D), lambda i: (i, 0)),
                    pl.BlockSpec((n_cb, K, D), lambda i: (0, 0, 0)),
                    pl.BlockSpec((n_cb, D, K), lambda i: (0, 0, 0)),
                    pl.BlockSpec((n_cb, 1, K), lambda i: (0, 0, 0)),
                ],
                out_specs=[
                    pl.BlockSpec((tm, D), lambda i: (i, 0)),
                    pl.BlockSpec((tm, n_cb), lambda i: (i, 0)),
                    pl.BlockSpec((1, 1), lambda i: (i, 0)),
                ],
            ),
            compiler_params=cparams,
        )(z_flat, cb, cb_t, c_sq[:, None, :])
        quant = quant_flat.reshape(B, N, D)
        ind = ind_rm.reshape(B, N, n_cb).transpose(0, 2, 1)

    # per codebook: 2 * mean over B*N*D elements; summed over codebooks.
    loss = 2.0 * jnp.sum(loss_part) / jnp.float32(M * D)
    return quant, ind, loss


def rq_reference(z, codebooks):
    """Pure-JAX reference mirroring the PyTorch RQ.forward semantics."""
    residual = z
    quant = jnp.zeros_like(z)
    inds, losses = [], []
    for cb in range(codebooks.shape[0]):
        c = codebooks[cb]
        dist = jnp.sum((residual[..., None, :] - c) ** 2, axis=-1)
        ind = jnp.argmin(dist, axis=-1)
        z_q = c[ind]
        losses.append(2.0 * jnp.mean((z_q - residual) ** 2))
        residual = residual - z_q
        quant = quant + z_q
        inds.append(ind)
    return quant, jnp.stack(inds, axis=1), jnp.sum(jnp.stack(losses))


if __name__ == "__main__":
    key = jax.random.PRNGKey(0)
    kz, kc, kz2, kc2 = jax.random.split(key, 4)

    # --- Feature-major path (D < 128): module demo shapes hidden_dim=32, k=16 ---
    B, N, D, K, n_cb = 2, 8, 32, 16, 3
    z = jax.random.normal(kz, (B, N, D), dtype=jnp.float32)
    codebooks = jax.random.uniform(
        kc, (n_cb, K, D), dtype=jnp.float32, minval=-1.0 / K, maxval=1.0 / K)

    quant_ref, ind_ref, loss_ref = rq_reference(z, codebooks)

    quant, ind, loss = rq_forward(z, codebooks)
    jax.block_until_ready((quant, ind, loss))
    assert quant.shape == (B, N, D)
    assert ind.shape == (B, n_cb, N)
    np.testing.assert_allclose(np.asarray(quant), np.asarray(quant_ref),
                               rtol=1e-5, atol=1e-5)
    np.testing.assert_array_equal(np.asarray(ind), np.asarray(ind_ref))
    np.testing.assert_allclose(np.asarray(loss), np.asarray(loss_ref),
                               rtol=5e-4, atol=1e-5)

    # Multi-tile + masked partial last tile: 25 copies -> M=400, tm=256, 2 tiles.
    reps = 25
    z_big = jnp.tile(z, (reps, 1, 1))
    quant_b, ind_b, loss_b = rq_forward(z_big, codebooks)
    jax.block_until_ready((quant_b, ind_b, loss_b))
    np.testing.assert_allclose(np.asarray(quant_b[:B]), np.asarray(quant_ref),
                               rtol=1e-5, atol=1e-5)
    np.testing.assert_array_equal(np.asarray(ind_b[:B]), np.asarray(ind_ref))
    np.testing.assert_allclose(np.asarray(loss_b), np.asarray(loss_ref),
                               rtol=5e-4, atol=1e-5)

    # --- Row-major path (D >= 128) ---
    D2, K2, n_cb2 = 128, 16, 2
    z2 = jax.random.normal(kz2, (B, N, D2), dtype=jnp.float32)
    codebooks2 = jax.random.uniform(
        kc2, (n_cb2, K2, D2), dtype=jnp.float32, minval=-1.0 / K2, maxval=1.0 / K2)
    q2_ref, i2_ref, l2_ref = rq_reference(z2, codebooks2)

    q2, i2, l2 = rq_forward(z2, codebooks2)
    jax.block_until_ready((q2, i2, l2))
    np.testing.assert_allclose(np.asarray(q2), np.asarray(q2_ref),
                               rtol=1e-5, atol=1e-5)
    np.testing.assert_array_equal(np.asarray(i2), np.asarray(i2_ref))
    np.testing.assert_allclose(np.asarray(l2), np.asarray(l2_ref),
                               rtol=5e-4, atol=1e-5)

    z2_big = jnp.tile(z2, (reps, 1, 1))
    q2b, i2b, l2b = rq_forward(z2_big, codebooks2)
    jax.block_until_ready((q2b, i2b, l2b))
    np.testing.assert_allclose(np.asarray(q2b[:B]), np.asarray(q2_ref),
                               rtol=1e-5, atol=1e-5)
    np.testing.assert_array_equal(np.asarray(i2b[:B]), np.asarray(i2_ref))
    np.testing.assert_allclose(np.asarray(l2b), np.asarray(l2_ref),
                               rtol=5e-4, atol=1e-5)

    print("KERNEL_OK")
</pallas_src>

<mosaic_0001>
module attributes {stable_mosaic.version = 11 : i64} {
  func.func @_rq_kernel_fm(%arg0: i32, %arg1: memref<32x16xf32, #tpu.memory_space<vmem>>, %arg2: memref<3x16x32xf32, #tpu.memory_space<vmem>>, %arg3: memref<3x32x16xf32, #tpu.memory_space<vmem>>, %arg4: memref<3x16x1xf32, #tpu.memory_space<vmem>>, %arg5: memref<32x16xf32, #tpu.memory_space<vmem>>, %arg6: memref<3x16xi32, #tpu.memory_space<vmem>>, %arg7: memref<1x1xf32, #tpu.memory_space<vmem>>) attributes {dimension_semantics = [#tpu.dimension_semantics<parallel>], iteration_bounds = array<i64: 1>, scalar_prefetch = 0 : i64, scratch_operands = 0 : i64, tpu.core_type = #tpu.core_type<tc>, window_params = [{transform_indices = @transform_0, window_bounds = array<i64: 32, 16>}, {pipeline_mode = #tpu.pipeline_mode<synchronous>, transform_indices = @transform_1, window_bounds = array<i64: 3, 16, 32>}, {pipeline_mode = #tpu.pipeline_mode<synchronous>, transform_indices = @transform_2, window_bounds = array<i64: 3, 32, 16>}, {pipeline_mode = #tpu.pipeline_mode<synchronous>, transform_indices = @transform_3, window_bounds = array<i64: 3, 16, 1>}, {transform_indices = @transform_4, window_bounds = array<i64: 32, 16>}, {transform_indices = @transform_5, window_bounds = array<i64: 3, 16>}, {transform_indices = @transform_6, window_bounds = array<i64: 1, 1>}]} {
    %c0 = arith.constant 0 : index
    %c0_0 = arith.constant 0 : index
    %0 = vector.load %arg1[%c0, %c0_0] : memref<32x16xf32, #tpu.memory_space<vmem>>, vector<32x16xf32>
    %cst = arith.constant 0.000000e+00 : f32
    %1 = vector.broadcast %cst : f32 to vector<32x16xf32>
    %2 = arith.mulf %0, %0 : vector<32x16xf32>
    %cst_1 = arith.constant dense<0.000000e+00> : vector<16xf32>
    %3 = vector.multi_reduction <add>, %2, %cst_1 [0] : vector<32x16xf32> to vector<16xf32>
    %4 = vector.shape_cast %3 : vector<16xf32> to vector<1x16xf32>
    %cst_2 = arith.constant 0.000000e+00 : f32
    %5 = vector.broadcast %cst_2 : f32 to vector<1x16xf32>
    %c0_3 = arith.constant 0 : index
    %c0_4 = arith.constant 0 : index
    %c0_5 = arith.constant 0 : index
    %6 = vector.load %arg2[%c0_3, %c0_4, %c0_5] : memref<3x16x32xf32, #tpu.memory_space<vmem>>, vector<1x16x32xf32>
    %7 = vector.shape_cast %6 : vector<1x16x32xf32> to vector<16x32xf32>
    %c0_6 = arith.constant 0 : index
    %c0_7 = arith.constant 0 : index
    %c0_8 = arith.constant 0 : index
    %8 = vector.load %arg3[%c0_6, %c0_7, %c0_8] : memref<3x32x16xf32, #tpu.memory_space<vmem>>, vector<1x32x16xf32>
    %9 = vector.shape_cast %8 : vector<1x32x16xf32> to vector<32x16xf32>
    %c0_9 = arith.constant 0 : index
    %c0_10 = arith.constant 0 : index
    %c0_11 = arith.constant 0 : index
    %10 = vector.load %arg4[%c0_9, %c0_10, %c0_11] : memref<3x16x1xf32, #tpu.memory_space<vmem>>, vector<1x16x1xf32>
    %11 = vector.shape_cast %10 : vector<1x16x1xf32> to vector<16x1xf32>
    %cst_12 = arith.constant dense<0.000000e+00> : vector<16x16xf32>
    %12 = tpu.matmul %7, %0, %cst_12 {dimension_numbers = #tpu.dot_dimension_numbers<[1], [0], [0], [1], [0, 0, 1, 1], [], []>} : vector<16x32xf32>, vector<32x16xf32>, vector<16x16xf32> -> vector<16x16xf32>
    %cst_13 = arith.constant 2.000000e+00 : f32
    %13 = vector.broadcast %cst_13 : f32 to vector<16x16xf32>
    %14 = arith.mulf %13, %12 : vector<16x16xf32>
    %15 = vector.broadcast %11 : vector<16x1xf32> to vector<16x16xf32>
    %16 = arith.subf %15, %14 : vector<16x16xf32>
    %cst_14 = arith.constant dense<0x7F800000> : vector<16xf32>
    %17 = vector.multi_reduction <minimumf>, %16, %cst_14 [0] : vector<16x16xf32> to vector<16xf32>
    %18 = vector.shape_cast %17 : vector<16xf32> to vector<1x16xf32>
    %19 = tpu.iota {dimensions = array<i32: 0>} : vector<16x16xi32>
    %20 = arith.sitofp %19 : vector<16x16xi32> to vector<16x16xf32>
    %21 = vector.broadcast %18 : vector<1x16xf32> to vector<16x16xf32>
    %22 = arith.cmpf oeq, %16, %21 : vector<16x16xf32>
    %cst_15 = arith.constant 1.600000e+01 : f32
    %23 = vector.broadcast %cst_15 : f32 to vector<16x16xf32>
    %24 = arith.select %22, %20, %23 : vector<16x16xi1>, vector<16x16xf32>
    %cst_16 = arith.constant dense<0x7F800000> : vector<16xf32>
    %25 = vector.multi_reduction <minimumf>, %24, %cst_16 [0] : vector<16x16xf32> to vector<16xf32>
    %26 = vector.shape_cast %25 : vector<16xf32> to vector<1x16xf32>
    %27 = arith.fptosi %26 : vector<1x16xf32> to vector<1x16xi32>
    %c0_17 = arith.constant 0 : index
    %c0_18 = arith.constant 0 : index
    %28 = vector.load %arg6[%c0_17, %c0_18] : memref<3x16xi32, #tpu.memory_space<vmem>>, vector<1x16xi32>
    tpu.vector_store %arg6[%c0_17, %c0_18], %27 {strides = array<i32>} : memref<3x16xi32, #tpu.memory_space<vmem>>, vector<1x16xi32>,
    %29 = vector.broadcast %26 : vector<1x16xf32> to vector<16x16xf32>
    %30 = arith.cmpf oeq, %20, %29 : vector<16x16xf32>
    %31 = arith.extui %30 : vector<16x16xi1> to vector<16x16xi32>
    %32 = arith.sitofp %31 : vector<16x16xi32> to vector<16x16xf32>
    %cst_19 = arith.constant dense<0.000000e+00> : vector<32x16xf32>
    %33 = tpu.matmul %9, %32, %cst_19 {dimension_numbers = #tpu.dot_dimension_numbers<[1], [0], [0], [1], [0, 0, 1, 1], [], []>} : vector<32x16xf32>, vector<16x16xf32>, vector<32x16xf32> -> vector<32x16xf32>
    %34 = arith.addf %4, %18 : vector<1x16xf32>
    %cst_20 = arith.constant 0.000000e+00 : f32
    %35 = vector.broadcast %cst_20 : f32 to vector<1x16xf32>
    %36 = arith.maximumf %34, %35 : vector<1x16xf32>
    %37 = arith.addf %5, %36 : vector<1x16xf32>
    %38 = arith.subf %0, %33 : vector<32x16xf32>
    %39 = arith.addf %1, %33 : vector<32x16xf32>
    %c1 = arith.constant 1 : index
    %c0_21 = arith.constant 0 : index
    %c0_22 = arith.constant 0 : index
    %40 = vector.load %arg2[%c1, %c0_21, %c0_22] : memref<3x16x32xf32, #tpu.memory_space<vmem>>, vector<1x16x32xf32>
    %41 = vector.shape_cast %40 : vector<1x16x32xf32> to vector<16x32xf32>
    %c1_23 = arith.constant 1 : index
    %c0_24 = arith.constant 0 : index
    %c0_25 = arith.constant 0 : index
    %42 = vector.load %arg3[%c1_23, %c0_24, %c0_25] : memref<3x32x16xf32, #tpu.memory_space<vmem>>, vector<1x32x16xf32>
    %43 = vector.shape_cast %42 : vector<1x32x16xf32> to vector<32x16xf32>
    %c1_26 = arith.constant 1 : index
    %c0_27 = arith.constant 0 : index
    %c0_28 = arith.constant 0 : index
    %44 = vector.load %arg4[%c1_26, %c0_27, %c0_28] : memref<3x16x1xf32, #tpu.memory_space<vmem>>, vector<1x16x1xf32>
    %45 = vector.shape_cast %44 : vector<1x16x1xf32> to vector<16x1xf32>
    %cst_29 = arith.constant dense<0.000000e+00> : vector<16x16xf32>
    %46 = tpu.matmul %41, %38, %cst_29 {dimension_numbers = #tpu.dot_dimension_numbers<[1], [0], [0], [1], [0, 0, 1, 1], [], []>} : vector<16x32xf32>, vector<32x16xf32>, vector<16x16xf32> -> vector<16x16xf32>
    %cst_30 = arith.constant 2.000000e+00 : f32
    %47 = vector.broadcast %cst_30 : f32 to vector<16x16xf32>
    %48 = arith.mulf %47, %46 : vector<16x16xf32>
    %49 = vector.broadcast %45 : vector<16x1xf32> to vector<16x16xf32>
    %50 = arith.subf %49, %48 : vector<16x16xf32>
    %cst_31 = arith.constant dense<0x7F800000> : vector<16xf32>
    %51 = vector.multi_reduction <minimumf>, %50, %cst_31 [0] : vector<16x16xf32> to vector<16xf32>
    %52 = vector.shape_cast %51 : vector<16xf32> to vector<1x16xf32>
    %53 = tpu.iota {dimensions = array<i32: 0>} : vector<16x16xi32>
    %54 = arith.sitofp %53 : vector<16x16xi32> to vector<16x16xf32>
    %55 = vector.broadcast %52 : vector<1x16xf32> to vector<16x16xf32>
    %56 = arith.cmpf oeq, %50, %55 : vector<16x16xf32>
    %cst_32 = arith.constant 1.600000e+01 : f32
    %57 = vector.broadcast %cst_32 : f32 to vector<16x16xf32>
    %58 = arith.select %56, %54, %57 : vector<16x16xi1>, vector<16x16xf32>
    %cst_33 = arith.constant dense<0x7F800000> : vector<16xf32>
    %59 = vector.multi_reduction <minimumf>, %58, %cst_33 [0] : vector<16x16xf32> to vector<16xf32>
    %60 = vector.shape_cast %59 : vector<16xf32> to vector<1x16xf32>
    %61 = arith.fptosi %60 : vector<1x16xf32> to vector<1x16xi32>
    %c1_34 = arith.constant 1 : index
    %c0_35 = arith.constant 0 : index
    %62 = vector.load %arg6[%c1_34, %c0_35] : memref<3x16xi32, #tpu.memory_space<vmem>>, vector<1x16xi32>
    tpu.vector_store %arg6[%c1_34, %c0_35], %61 {strides = array<i32>} : memref<3x16xi32, #tpu.memory_space<vmem>>, vector<1x16xi32>,
    %63 = vector.broadcast %60 : vector<1x16xf32> to vector<16x16xf32>
    %64 = arith.cmpf oeq, %54, %63 : vector<16x16xf32>
    %65 = arith.extui %64 : vector<16x16xi1> to vector<16x16xi32>
    %66 = arith.sitofp %65 : vector<16x16xi32> to vector<16x16xf32>
    %cst_36 = arith.constant dense<0.000000e+00> : vector<32x16xf32>
    %67 = tpu.matmul %43, %66, %cst_36 {dimension_numbers = #tpu.dot_dimension_numbers<[1], [0], [0], [1], [0, 0, 1, 1], [], []>} : vector<32x16xf32>, vector<16x16xf32>, vector<32x16xf32> -> vector<32x16xf32>
    %68 = arith.addf %36, %52 : vector<1x16xf32>
    %cst_37 = arith.constant 0.000000e+00 : f32
    %69 = vector.broadcast %cst_37 : f32 to vector<1x16xf32>
    %70 = arith.maximumf %68, %69 : vector<1x16xf32>
    %71 = arith.addf %37, %70 : vector<1x16xf32>
    %72 = arith.subf %38, %67 : vector<32x16xf32>
    %73 = arith.addf %39, %67 : vector<32x16xf32>
    %c2 = arith.constant 2 : index
    %c0_38 = arith.constant 0 : index
    %c0_39 = arith.constant 0 : index
    %74 = vector.load %arg2[%c2, %c0_38, %c0_39] : memref<3x16x32xf32, #tpu.memory_space<vmem>>, vector<1x16x32xf32>
    %75 = vector.shape_cast %74 : vector<1x16x32xf32> to vector<16x32xf32>
    %c2_40 = arith.constant 2 : index
    %c0_41 = arith.constant 0 : index
    %c0_42 = arith.constant 0 : index
    %76 = vector.load %arg3[%c2_40, %c0_41, %c0_42] : memref<3x32x16xf32, #tpu.memory_space<vmem>>, vector<1x32x16xf32>
    %77 = vector.shape_cast %76 : vector<1x32x16xf32> to vector<32x16xf32>
    %c2_43 = arith.constant 2 : index
    %c0_44 = arith.constant 0 : index
    %c0_45 = arith.constant 0 : index
    %78 = vector.load %arg4[%c2_43, %c0_44, %c0_45] : memref<3x16x1xf32, #tpu.memory_space<vmem>>, vector<1x16x1xf32>
    %79 = vector.shape_cast %78 : vector<1x16x1xf32> to vector<16x1xf32>
    %cst_46 = arith.constant dense<0.000000e+00> : vector<16x16xf32>
    %80 = tpu.matmul %75, %72, %cst_46 {dimension_numbers = #tpu.dot_dimension_numbers<[1], [0], [0], [1], [0, 0, 1, 1], [], []>} : vector<16x32xf32>, vector<32x16xf32>, vector<16x16xf32> -> vector<16x16xf32>
    %cst_47 = arith.constant 2.000000e+00 : f32
    %81 = vector.broadcast %cst_47 : f32 to vector<16x16xf32>
    %82 = arith.mulf %81, %80 : vector<16x16xf32>
    %83 = vector.broadcast %79 : vector<16x1xf32> to vector<16x16xf32>
    %84 = arith.subf %83, %82 : vector<16x16xf32>
    %cst_48 = arith.constant dense<0x7F800000> : vector<16xf32>
    %85 = vector.multi_reduction <minimumf>, %84, %cst_48 [0] : vector<16x16xf32> to vector<16xf32>
    %86 = vector.shape_cast %85 : vector<16xf32> to vector<1x16xf32>
    %87 = tpu.iota {dimensions = array<i32: 0>} : vector<16x16xi32>
    %88 = arith.sitofp %87 : vector<16x16xi32> to vector<16x16xf32>
    %89 = vector.broadcast %86 : vector<1x16xf32> to vector<16x16xf32>
    %90 = arith.cmpf oeq, %84, %89 : vector<16x16xf32>
    %cst_49 = arith.constant 1.600000e+01 : f32
    %91 = vector.broadcast %cst_49 : f32 to vector<16x16xf32>
    %92 = arith.select %90, %88, %91 : vector<16x16xi1>, vector<16x16xf32>
    %cst_50 = arith.constant dense<0x7F800000> : vector<16xf32>
    %93 = vector.multi_reduction <minimumf>, %92, %cst_50 [0] : vector<16x16xf32> to vector<16xf32>
    %94 = vector.shape_cast %93 : vector<16xf32> to vector<1x16xf32>
    %95 = arith.fptosi %94 : vector<1x16xf32> to vector<1x16xi32>
    %c2_51 = arith.constant 2 : index
    %c0_52 = arith.constant 0 : index
    %96 = vector.load %arg6[%c2_51, %c0_52] : memref<3x16xi32, #tpu.memory_space<vmem>>, vector<1x16xi32>
    tpu.vector_store %arg6[%c2_51, %c0_52], %95 {strides = array<i32>} : memref<3x16xi32, #tpu.memory_space<vmem>>, vector<1x16xi32>,
    %97 = vector.broadcast %94 : vector<1x16xf32> to vector<16x16xf32>
    %98 = arith.cmpf oeq, %88, %97 : vector<16x16xf32>
    %99 = arith.extui %98 : vector<16x16xi1> to vector<16x16xi32>
    %100 = arith.sitofp %99 : vector<16x16xi32> to vector<16x16xf32>
    %cst_53 = arith.constant dense<0.000000e+00> : vector<32x16xf32>
    %101 = tpu.matmul %77, %100, %cst_53 {dimension_numbers = #tpu.dot_dimension_numbers<[1], [0], [0], [1], [0, 0, 1, 1], [], []>} : vector<32x16xf32>, vector<16x16xf32>, vector<32x16xf32> -> vector<32x16xf32>
    %102 = arith.addf %70, %86 : vector<1x16xf32>
    %cst_54 = arith.constant 0.000000e+00 : f32
    %103 = vector.broadcast %cst_54 : f32 to vector<1x16xf32>
    %104 = arith.maximumf %102, %103 : vector<1x16xf32>
    %105 = arith.addf %71, %104 : vector<1x16xf32>
    %106 = arith.addf %73, %101 : vector<32x16xf32>
    %c0_55 = arith.constant 0 : index
    %c0_56 = arith.constant 0 : index
    %107 = vector.load %arg5[%c0_55, %c0_56] : memref<32x16xf32, #tpu.memory_space<vmem>>, vector<32x16xf32>
    tpu.vector_store %arg5[%c0_55, %c0_56], %106 {strides = array<i32>} : memref<32x16xf32, #tpu.memory_space<vmem>>, vector<32x16xf32>,
    %cst_57 = arith.constant dense<0.000000e+00> : vector<1xf32>
    %108 = vector.multi_reduction <add>, %105, %cst_57 [1] : vector<1x16xf32> to vector<1xf32>
    %109 = vector.shape_cast %108 : vector<1xf32> to vector<1x1xf32>
    %c0_58 = arith.constant 0 : index
    %c0_59 = arith.constant 0 : index
    %110 = vector.load %arg7[%c0_58, %c0_59] : memref<1x1xf32, #tpu.memory_space<vmem>>, vector<1x1xf32>
    tpu.vector_store %arg7[%c0_58, %c0_59], %109 {strides = array<i32>} : memref<1x1xf32, #tpu.memory_space<vmem>>, vector<1x1xf32>,
    return
  }
  func.func @transform_0(%arg0: i32) -> (i32, i32) {
    %c0_i32 = arith.constant 0 : i32
    %c0_i32_0 = arith.constant 0 : i32
    return %c0_i32, %arg0 : i32, i32
  }
  func.func @transform_1(%arg0: i32) -> (i32, i32, i32) {
    %c0_i32 = arith.constant 0 : i32
    %c0_i32_0 = arith.constant 0 : i32
    %c0_i32_1 = arith.constant 0 : i32
    %c0_i32_2 = arith.constant 0 : i32
    return %c0_i32, %c0_i32_0, %c0_i32_1 : i32, i32, i32
  }
  func.func @transform_2(%arg0: i32) -> (i32, i32, i32) {
    %c0_i32 = arith.constant 0 : i32
    %c0_i32_0 = arith.constant 0 : i32
    %c0_i32_1 = arith.constant 0 : i32
    %c0_i32_2 = arith.constant 0 : i32
    return %c0_i32, %c0_i32_0, %c0_i32_1 : i32, i32, i32
  }
  func.func @transform_3(%arg0: i32) -> (i32, i32, i32) {
    %c0_i32 = arith.constant 0 : i32
    %c0_i32_0 = arith.constant 0 : i32
    %c0_i32_1 = arith.constant 0 : i32
    %c0_i32_2 = arith.constant 0 : i32
    return %c0_i32, %c0_i32_0, %c0_i32_1 : i32, i32, i32
  }
  func.func @transform_4(%arg0: i32) -> (i32, i32) {
    %c0_i32 = arith.constant 0 : i32
    %c0_i32_0 = arith.constant 0 : i32
    return %c0_i32, %arg0 : i32, i32
  }
  func.func @transform_5(%arg0: i32) -> (i32, i32) {
    %c0_i32 = arith.constant 0 : i32
    %c0_i32_0 = arith.constant 0 : i32
    return %c0_i32, %arg0 : i32, i32
  }
  func.func @transform_6(%arg0: i32) -> (i32, i32) {
    %c0_i32 = arith.constant 0 : i32
    %c0_i32_0 = arith.constant 0 : i32
    return %arg0, %c0_i32 : i32, i32
  }
}

</mosaic_0001>

<bundles_post_ra>
// kernel: tpu_custom_call.1
= control target key start
LH: loop header
LB: loop body
LE: loop exit
PB: predicated region body
PF: predicated region fallthrough
CT: control target
= control target key end

     0   :  { %12 = vsyncpa [#allocation3], 0  ;;  %vm52_vm0 = vcmask 261120   ;;  %v1058_v6 = vmov 0   ;;  %s1364_s0 = inlined_call_operand.vmem [shape: f32[32,16], index: 0, kind: input, shape index: {}]   ;;  %s1365_s1 = inlined_call_operand.vmem [shape: f32[3,16,32], index: 1, kind: input, shape index: {}]   ;;  %s1366_s2 = inlined_call_operand.vmem [shape: f32[3,32,16], index: 2, kind: input, shape index: {}]   ;;  %s1367_s3 = inlined_call_operand.vmem [shape: f32[3,16,1], index: 3, kind: input, shape index: {}]   ;;  %s1368_s4 = inlined_call_operand.vmem [shape: f32[32,16], index: 4, kind: output, shape index: {0}]   ;;  %s1369_s5 = inlined_call_operand.hbm [shape: s32[3,16], index: 5, kind: output, shape index: {1}]   ;;  %s1370_s6 = inlined_call_operand.hbm [shape: f32[1,1], index: 6, kind: output, shape index: {2}]  }
   0x1   :  { %v1100_v0 = vld [vmem:[%s1364_s0] sm:$0xff]  ;;  %v1105_v1 = vld [vmem:[%s1364_s0 + $0x8] sm:$0xff]  ;;  %v1110_v2 = vld [vmem:[%s1364_s0 + $0x10] sm:$0xff]  ;;  %1008 = vset.pattern.permute.xlu0 %v1058_v6  ;;  %1009 = vset.pattern.permute.xlu1 %v1058_v6 }
   0x2   :  { %v962_v3 = vpack.c.bf16 %v1105_v1, %v1100_v0  ;;  %v1117_v4 = vld [vmem:[%s1364_s0 + $0x18] sm:$0xff]  ;;  %v44_v5 = vld [vmem:[%s1365_s1] sm:$0xff] }
   0x3   :  { %v966_v7 = vpack.c.bf16 %v1117_v4, %v1110_v2  ;;  %907 = vmatprep.mubr.msk.f32.mxu0 %vm52_vm0, %v44_v5  ;;  %v50_v8 = vld [vmem:[%s1367_s3] sm:$0xff] }
   0x4   :  { %963 = vmatprep.subr.bf16.mxu0 %v962_v3  ;;  %138 = vperm.xlu0 %1008, %v50_v8  }
   0x5   :  { %13 = vsyncpa [#allocation5], 0  ;;  %965 = vmatpush3.bf16.msra.mxu0 %v962_v3  ;;  %v51_v9 = vld [vmem:[%s1367_s3 + $0x8] sm:$0xff]  ;;  %v851_v11 = vld [vmem:[%s1367_s3 + $0x20] sm:$0xff]  ;;  %vm30_vm1 = vcmask 130048   ;;  %v157_v23 = vlaneseq  ;;  %vm176_vm7 = vcmask 122880   ;;  %v26_v8 = vmul.f32 %v1100_v0, %v1100_v0 }
   0x6   :  { %967 = vmatprep.subr.bf16.mxu0 %v966_v7  ;;  %v45_v10 = vld [vmem:[%s1365_s1 + $0x8] sm:$0xff]  ;;  %v46_v12 = vld [vmem:[%s1366_s2] sm:$0xff]  ;;  %v1059_v47 = vmov 1.0|1.0   ;;  %v48_v50 = vld [vmem:[%s1366_s2 + $0x10] sm:$0xff]  ;;  %s1060_s25 = smov [#allocation2]  }
   0x7   :  { %914 = vmatprep.mubr.msk.f32.mxu1 %vm30_vm1, %v46_v12  ;;  %v158_v26 = vshrl.u32 %v157_v23, 7  ;;  %v47_v49 = vld [vmem:[%s1366_s2 + $0x8] sm:$0xff]  ;;  %v49_v51 = vld [vmem:[%s1366_s2 + $0x18] sm:$0xff]  ;;  %v827_v52 = vld [vmem:[%s1365_s1 + $0x10] sm:$0xff]  ;;  %v28_v12 = vmul.f32 %v1110_v2, %v1110_v2  ;;  %s793_s26 = sshll.u32 %s1060_s25, 4  ;;  %s794_s26 = int_to_ptr.vmem [resolvable:$true] %s793_s26 }
   0x8   :  { %143 = vperm.xlu0 %1008, %v51_v9   ;;  %v833_v53 = vld [vmem:[%s1367_s3 + $0x10] sm:$0xff]  ;;  %v834_v54 = vld [vmem:[%s1367_s3 + $0x18] sm:$0xff]  ;;  %v852_v55 = vld [vmem:[%s1367_s3 + $0x28] sm:$0xff]  ;;  %v27_v9 = vmul.f32 %v1105_v1, %v1105_v1  ;;  %s1010_s27 = scalar_lea.vmem %s794_s26, 64  ;;  %p1015_p1 = scmp.lt.s32.totalorder %s794_s26, %s794_s26 }
   0x9   :  { %969 = vmatpush3.bf16.msra.mxu0 %v966_v7  ;;  %v159_v29 = vadd.s32 8, %v158_v26  ;;  %v1144_v32 = vcvt.s32.f32 %v158_v26  ;;  %388 = vperm.xlu1 %1009, %v833_v53   ;;  %v828_v6 = vld [vmem:[%s1365_s1 + $0x18] sm:$0xff]  ;;  %v829_v7 = vld [vmem:[%s1366_s2 + $0x20] sm:$0xff]  ;;  %p1011_p0 = scmp.ne.s32.totalorder %s794_s26, %s1010_s27  ;;  %p1016_p2 = scmp.lt.s32.totalorder %s1010_s27, %s1010_s27 }
   0xb   :  { %v1146_v33 = vcvt.s32.f32 %v159_v29  ;;  %p1017_p3 = por %p1016_p2, %p1015_p1 }
   0xc   :  { %908 = vmatmul.mubr.msk.f32.vlgmr.msra.gmra.mrb[0].mxu0 %vm52_vm0, %v45_v10  ;;  %632 = vperm.xlu0 %1008, %v851_v11   ;;  %v31_v10 = vsel %vm30_vm1, %v26_v8, 0.0  ;;  %v32_v11 = vsel %vm30_vm1, %v27_v9, 0.0  ;;  %v831_v8 = vld [vmem:[%s1366_s2 + $0x30] sm:$0xff]  ;;  %v832_v9 = vld [vmem:[%s1366_s2 + $0x38] sm:$0xff] }
   0xd   :  { %393 = vperm.xlu1 %1009, %v834_v54   ;;  %935 = vmatprep.mubr.msk.f32.mxu0 %vm30_vm1, %v829_v7  ;;  %v830_v7 = vld [vmem:[%s1366_s2 + $0x28] sm:$0xff]  ;;  %p1018_p4 = pnand %p1017_p3, %p1011_p0 }
  0x11   :  { %637 = vperm.xlu1 %1009, %v852_v55  }
  0x83   :  { %v139_v13 = vpop.permute.xlu0 %138 }
  0x87   :  { %v144_v17 = vpop.permute.xlu0 %143 }
  0xdf   :  { %v909_v14 = vpop.f32.mrb[0].mxu0 }
  0xe0   :  { %v135_v15 = vmul.f32 2.0, %v909_v14  ;;  %v125_v16 = vpop.f32.mrb[1].mxu0  ;;  %v29_v14 = vmul.f32 %v1117_v4, %v1117_v4 }
  0xe1   :  { %v134_v18 = vmul.f32 2.0, %v125_v16 }
  0xe2   :  { %v147_v19 = vsub.f32 %v144_v17, %v135_v15  ;;  %v34_v15 = vsel %vm30_vm1, %v28_v12, 0.0  ;;  %v36_v17 = vsel %vm30_vm1, %v29_v14, 0.0 }
  0xe3   :  { %v146_v20 = vsub.f32 %v139_v13, %v134_v18  ;;  %v33_v13 = vadd.f32 %v32_v11, %v31_v10  ;;  %v845_v10 = vld [vmem:[%s1365_s1 + $0x20] sm:$0xff] }
  0xe4   :  { %v149_v21 = vsel %vm30_vm1, %v147_v19, inf }
  0xe5   :  { %v148_v22 = vsel %vm30_vm1, %v146_v20, inf  ;;  %v35_v16 = vadd.f32 %v34_v15, %v33_v13 }
  0xe6   :  { %v150_v24 = vmin.f32 %v148_v22, %v149_v21 }
  0xe8   :  { %v151_v25 = vrot.slane %v150_v24, 4 }
  0xea   :  { %v152_v27 = vmin.f32 %v150_v24, %v151_v25 }
  0xec   :  { %v153_v28 = vrot.slane %v152_v27, 2 }
  0xee   :  { %v154_v30 = vmin.f32 %v152_v27, %v153_v28 }
  0xf0   :  { %v155_v31 = vrot.slane %v154_v30, 1 }
  0xf2   :  { %v1148_v34 = vmin.f32 %v154_v30, %v155_v31 }
  0xf4   :  { %vm162_vm2 = vcmp.eq.f32.partialorder %v146_v20, %v1148_v34  ;;  %vm163_vm3 = vcmp.eq.f32.partialorder %v147_v19, %v1148_v34 }
  0xf5   :  { %v164_v35 = vsel %vm162_vm2, %v1144_v32, 16.0  ;;  %v165_v36 = vsel %vm163_vm3, %v1146_v33, 16.0 }
  0xf6   :  { %v166_v37 = vsel %vm30_vm1, %v164_v35, inf  ;;  %v167_v38 = vsel %vm30_vm1, %v165_v36, inf }
  0xf7   :  { %v168_v39 = vmin.f32 %v166_v37, %v167_v38 }
  0xf9   :  { %v169_v40 = vrot.slane %v168_v39, 4 }
  0xfb   :  { %v170_v41 = vmin.f32 %v168_v39, %v169_v40 }
  0xfd   :  { %v171_v42 = vrot.slane %v170_v41, 2 }
  0xff   :  { %v172_v43 = vmin.f32 %v170_v41, %v171_v42 }
 0x101   :  { %v173_v44 = vrot.slane %v172_v43, 1 }
 0x103   :  { %v174_v45 = vmin.f32 %v172_v43, %v173_v44 }
 0x105   :  { %vm178_vm4 = vcmp.eq.f32.partialorder %v1144_v32, %v174_v45  ;;  %vm179_vm5 = vcmp.eq.f32.partialorder %v1146_v33, %v174_v45  ;;  %v998_v46 = vtrunc.f32 %v174_v45 }
 0x106   :  { %vm970_vm6 = vmpackc.low %vm179_vm5, %vm178_vm4 }
 0x107   :  { %971 = vmatprep.subr.msk.bf16.mxu1 %vm970_vm6, %v1059_v47  ;;  %v999_v48 = vcvt.f32.s32 %v998_v46 }
 0x108   :  { %973 = vmatpush3.bf16.msk.msra.mxu1 %vm970_vm6, %v1059_v47 }
 0x109   :  { %177 = vst.msk [vmem:[#allocation2] sm:$0x1] %vm176_vm7, %v999_v48 }
 0x10b   :  { %915 = vmatmul.mubr.msk.f32.vlgmr.msra.gmra.mrb[0].mxu1 %vm30_vm1, %v47_v49 }
 0x10c   :  { %917 = vmatprep.mubr.msk.f32.mxu1 %vm30_vm1, %v48_v50 }
 0x10f   :  { %918 = vmatmul.mubr.msk.f32.gmra.mrb[2].mxu1 %vm30_vm1, %v49_v51 }
 0x110   :  { %928 = vmatprep.mubr.msk.f32.mxu1 %vm52_vm0, %v827_v52 }
 0x1de   :  { %v1186_v56 = vpop.f32.mrb[0].mxu1 }
 0x1df   :  { %v1190_v57 = vsub.f32 %v1105_v1, %v1186_v56  ;;  %v1192_v58 = vpop.f32.mrb[1].mxu1  ;;  %v389_v1 = vpop.permute.xlu1 %388 }
 0x1e0   :  { %v1196_v59 = vsub.f32 %v1100_v0, %v1192_v58  ;;  %v37_v0 = vadd.f32 %v36_v17, %v35_v16 }
 0x1e2   :  { %v974_v60 = vpack.c.bf16 %v1190_v57, %v1196_v59  ;;  %v1200_v61 = vpop.f32.mrb[2].mxu1  ;;  %v38_v18 = vrot.slane %v37_v0, 4 }
 0x1e3   :  { %v1204_v62 = vsub.f32 %v1117_v4, %v1200_v61  ;;  %v1206_v63 = vpop.f32.mrb[3].mxu1  ;;  %v394_v24 = vpop.permute.xlu1 %393 }
 0x1e4   :  { %v1210_v3 = vsub.f32 %v1110_v2, %v1206_v63  ;;  %975 = vmatprep.subr.bf16.mxu1 %v974_v60  ;;  %v39_v19 = vadd.f32 %v38_v18, %v37_v0 }
 0x1e5   :  { %977 = vmatpush3.bf16.msra.mxu1 %v974_v60 }
 0x1e6   :  { %v978_v5 = vpack.c.bf16 %v1204_v62, %v1210_v3  ;;  %v40_v20 = vrot.slane %v39_v19, 2 }
 0x1e8   :  { %979 = vmatprep.subr.bf16.mxu1 %v978_v5  ;;  %v41_v26 = vadd.f32 %v40_v20, %v39_v19 }
 0x1e9   :  { %981 = vmatpush3.bf16.msra.mxu1 %v978_v5 }
 0x1ea   :  { %v42_v30 = vrot.slane %v41_v26, 1 }
 0x1ec   :  { %929 = vmatmul.mubr.msk.f32.vlgmr.msra.gmra.mrb[4].mxu1 %vm52_vm0, %v828_v6  ;;  %v43_v36 = vadd.f32 %v42_v30, %v41_v26 }
 0x1ee   :  { %v281_v39 = vadd.f32 %v1148_v34, %v43_v36 }
 0x1f0   :  { %v282_v42 = vmax.f32 %v281_v39, 0.0 }
 0x2bf   :  { %v930_v21 = vpop.f32.mrb[4].mxu1 }
 0x2c0   :  { %v385_v22 = vmul.f32 2.0, %v930_v21  ;;  %v375_v23 = vpop.f32.mrb[5].mxu1 }
 0x2c1   :  { %v384_v25 = vmul.f32 2.0, %v375_v23 }
 0x2c2   :  { %v397_v2 = vsub.f32 %v394_v24, %v385_v22  ;;  %v633_v22 = vpop.permute.xlu0 %632 }
 0x2c3   :  { %v396_v27 = vsub.f32 %v389_v1, %v384_v25 }
 0x2c4   :  { %v399_v4 = vsel %vm30_vm1, %v397_v2, inf }
 0x2c5   :  { %v398_v28 = vsel %vm30_vm1, %v396_v27, inf }
 0x2c6   :  { %v400_v29 = vmin.f32 %v398_v28, %v399_v4 }
 0x2c8   :  { %v401_v31 = vrot.slane %v400_v29, 4 }
 0x2ca   :  { %v402_v35 = vmin.f32 %v400_v29, %v401_v31 }
 0x2cc   :  { %v403_v37 = vrot.slane %v402_v35, 2 }
 0x2ce   :  { %v404_v38 = vmin.f32 %v402_v35, %v403_v37 }
 0x2d0   :  { %v405_v40 = vrot.slane %v404_v38, 1 }
 0x2d2   :  { %v406_v41 = vmin.f32 %v404_v38, %v405_v40 }
 0x2d4   :  { %vm407_vm8 = vcmp.eq.f32.partialorder %v396_v27, %v406_v41  ;;  %vm408_vm9 = vcmp.eq.f32.partialorder %v397_v2, %v406_v41  ;;  %v1237_v43 = vadd.f32 %v406_v41, %v282_v42 }
 0x2d5   :  { %v409_v44 = vsel %vm407_vm8, %v1144_v32, 16.0  ;;  %v410_v45 = vsel %vm408_vm9, %v1146_v33, 16.0 }
 0x2d6   :  { %v411_v46 = vsel %vm30_vm1, %v409_v44, inf  ;;  %v412_v48 = vsel %vm30_vm1, %v410_v45, inf  ;;  %v526_v49 = vmax.f32 %v1237_v43, 0.0 }
 0x2d7   :  { %v413_v50 = vmin.f32 %v411_v46, %v412_v48 }
 0x2d8   :  { %v1246_v34 = vadd.f32 %v526_v49, %v282_v42 }
 0x2d9   :  { %v414_v51 = vrot.slane %v413_v50, 4 }
 0x2db   :  { %v415_v52 = vmin.f32 %v413_v50, %v414_v51 }
 0x2dd   :  { %v416_v53 = vrot.slane %v415_v52, 2 }
 0x2df   :  { %v417_v54 = vmin.f32 %v415_v52, %v416_v53  ;;  %v849_v53 = vld [vmem:[%s1366_s2 + $0x50] sm:$0xff] }
 0x2e1   :  { %v418_v55 = vrot.slane %v417_v54, 1 }
 0x2e3   :  { %v419_v60 = vmin.f32 %v417_v54, %v418_v55 }
 0x2e5   :  { %vm422_vm10 = vcmp.eq.f32.partialorder %v1144_v32, %v419_v60  ;;  %vm423_vm11 = vcmp.eq.f32.partialorder %v1146_v33, %v419_v60  ;;  %v1000_v5 = vtrunc.f32 %v419_v60 }
 0x2e6   :  { %vm982_vm12 = vmpackc.low %vm423_vm11, %vm422_vm10 }
 0x2e7   :  { %983 = vmatprep.subr.msk.bf16.mxu0 %vm982_vm12, %v1059_v47  ;;  %v1001_v6 = vcvt.f32.s32 %v1000_v5 }
 0x2e8   :  { %985 = vmatpush3.bf16.msk.msra.mxu0 %vm982_vm12, %v1059_v47 }
 0x2e9   :  { %421 = vst.msk [vmem:[#allocation2 + $0x1] sm:$0x1] %vm176_vm7, %v1001_v6 }
 0x2eb   :  { %936 = vmatmul.mubr.msk.f32.vlgmr.msra.gmra.mrb[2].mxu0 %vm30_vm1, %v830_v7 }
 0x2ec   :  { %938 = vmatprep.mubr.msk.f32.mxu0 %vm30_vm1, %v831_v8 }
 0x2ef   :  { %939 = vmatmul.mubr.msk.f32.gmra.mrb[4].mxu0 %vm30_vm1, %v832_v9 }
 0x2f0   :  { %949 = vmatprep.mubr.msk.f32.mxu0 %vm52_vm0, %v845_v10 }
 0x3be   :  { %v937_v11 = vpop.f32.mrb[2].mxu0 }
 0x3bf   :  { %v529_v12 = vsub.f32 %v1190_v57, %v937_v11  ;;  %v1271_v13 = vadd.f32 %v937_v11, %v1186_v56  ;;  %v506_v14 = vpop.f32.mrb[3].mxu0 }
 0x3c0   :  { %v528_v15 = vsub.f32 %v1196_v59, %v506_v14  ;;  %v1275_v16 = vadd.f32 %v506_v14, %v1192_v58  ;;  %v846_v58 = vld [vmem:[%s1365_s1 + $0x28] sm:$0xff]  ;;  %v847_v59 = vld [vmem:[%s1366_s2 + $0x40] sm:$0xff] }
 0x3c1   :  { %956 = vmatprep.mubr.msk.f32.mxu1 %vm30_vm1, %v847_v59 }
 0x3c2   :  { %v986_v17 = vpack.c.bf16 %v529_v12, %v528_v15  ;;  %v940_v0 = vpop.f32.mrb[4].mxu0 }
 0x3c3   :  { %v531_v18 = vsub.f32 %v1204_v62, %v940_v0  ;;  %v1279_v19 = vadd.f32 %v940_v0, %v1200_v61  ;;  %v516_v1 = vpop.f32.mrb[5].mxu0 }
 0x3c4   :  { %v530_v20 = vsub.f32 %v1210_v3, %v516_v1  ;;  %v1283_v57 = vadd.f32 %v516_v1, %v1206_v63  ;;  %987 = vmatprep.subr.bf16.mxu0 %v986_v17  ;;  %v638_v3 = vpop.permute.xlu1 %637 }
 0x3c5   :  { %989 = vmatpush3.bf16.msra.mxu0 %v986_v17 }
 0x3c6   :  { %v990_v56 = vpack.c.bf16 %v531_v18, %v530_v20 }
 0x3c8   :  { %991 = vmatprep.subr.bf16.mxu0 %v990_v56 }
 0x3c9   :  { %993 = vmatpush3.bf16.msra.mxu0 %v990_v56 }
 0x3cc   :  { %950 = vmatmul.mubr.msk.f32.vlgmr.msra.gmra.mrb[6].mxu0 %vm52_vm0, %v846_v58 }
 0x49f   :  { %v951_v61 = vpop.f32.mrb[6].mxu0 }
 0x4a0   :  { %v629_v62 = vmul.f32 2.0, %v951_v61  ;;  %v619_v63 = vpop.f32.mrb[7].mxu0 }
 0x4a1   :  { %v628_v21 = vmul.f32 2.0, %v619_v63 }
 0x4a2   :  { %v641_v23 = vsub.f32 %v638_v3, %v629_v62 }
 0x4a3   :  { %v640_v24 = vsub.f32 %v633_v22, %v628_v21 }
 0x4a4   :  { %v643_v25 = vsel %vm30_vm1, %v641_v23, inf }
 0x4a5   :  { %v642_v2 = vsel %vm30_vm1, %v640_v24, inf }
 0x4a6   :  { %v644_v26 = vmin.f32 %v642_v2, %v643_v25 }
 0x4a8   :  { %v645_v27 = vrot.slane %v644_v26, 4 }
 0x4aa   :  { %v646_v4 = vmin.f32 %v644_v26, %v645_v27 }
 0x4ac   :  { %v647_v28 = vrot.slane %v646_v4, 2 }
 0x4ae   :  { %v648_v29 = vmin.f32 %v646_v4, %v647_v28 }
 0x4b0   :  { %v649_v30 = vrot.slane %v648_v29, 1 }
 0x4b2   :  { %v650_v31 = vmin.f32 %v648_v29, %v649_v30 }
 0x4b4   :  { %vm651_vm13 = vcmp.eq.f32.partialorder %v640_v24, %v650_v31  ;;  %vm652_vm14 = vcmp.eq.f32.partialorder %v641_v23, %v650_v31  ;;  %v769_v35 = vadd.f32 %v650_v31, %v526_v49 }
 0x4b5   :  { %v653_v36 = vsel %vm651_vm13, %v1144_v32, 16.0  ;;  %v654_v37 = vsel %vm652_vm14, %v1146_v33, 16.0 }
 0x4b6   :  { %v655_v38 = vsel %vm30_vm1, %v653_v36, inf  ;;  %v656_v39 = vsel %vm30_vm1, %v654_v37, inf  ;;  %v770_v40 = vmax.f32 %v769_v35, 0.0 }
 0x4b7   :  { %v657_v41 = vmin.f32 %v655_v38, %v656_v39 }
 0x4b8   :  { %v771_v42 = vadd.f32 %v770_v40, %v1246_v34  ;;  %v848_v34 = vld [vmem:[%s1366_s2 + $0x48] sm:$0xff] }
 0x4b9   :  { %v658_v44 = vrot.slane %v657_v41, 4 }
 0x4ba   :  { %v780_v45 = vsel %vm30_vm1, %v771_v42, 0.0 }
 0x4bb   :  { %v659_v46 = vmin.f32 %v657_v41, %v658_v44  ;;  %781 = vadd.xlane.f32.xlu0 %v780_v45 }
 0x4bd   :  { %v660_v48 = vrot.slane %v659_v46, 2 }
 0x4bf   :  { %v661_v43 = vmin.f32 %v659_v46, %v660_v48 }
 0x4c1   :  { %v662_v49 = vrot.slane %v661_v43, 1 }
 0x4c3   :  { %v663_v50 = vmin.f32 %v661_v43, %v662_v49 }
 0x4c5   :  { %vm666_vm15 = vcmp.eq.f32.partialorder %v1144_v32, %v663_v50  ;;  %vm667_vm0 = vcmp.eq.f32.partialorder %v1146_v33, %v663_v50  ;;  %v1002_v51 = vtrunc.f32 %v663_v50  ;;  %v850_v32 = vld [vmem:[%s1366_s2 + $0x58] sm:$0xff] }
 0x4c6   :  { %vm994_vm2 = vmpackc.low %vm667_vm0, %vm666_vm15 }
 0x4c7   :  { %995 = vmatprep.subr.msk.bf16.mxu1 %vm994_vm2, %v1059_v47  ;;  %v1003_v52 = vcvt.f32.s32 %v1002_v51 }
 0x4c8   :  { %997 = vmatpush3.bf16.msk.msra.mxu1 %vm994_vm2, %v1059_v47 }
 0x4c9   :  { %665 = vst.msk [vmem:[#allocation2 + $0x2] sm:$0x1] %vm176_vm7, %v1003_v52 }
 0x4cb   :  { %957 = vmatmul.mubr.msk.f32.vlgmr.msra.gmra.mrb[6].mxu1 %vm30_vm1, %v848_v34 }
 0x4cc   :  { %959 = vmatprep.mubr.msk.f32.mxu1 %vm30_vm1, %v849_v53 }
 0x4cf   :  { %960 = vmatmul.mubr.msk.f32.gmra.mrb[8].mxu1 %vm30_vm1, %v850_v32 }
 0x4d0   :  { %1021 = shalt.err (!%p1018_p4)
}
 0x4d1   :  { %s1022_s3 = scalar_lea.hbm %s1369_s5, 64 }
 0x4d2   :  { %p1023_p5 = scmp.ne.s32.totalorder %s1369_s5, %s1022_s3  ;;  %p1026_p6 = scmp.lt.u32.totalorder %s1022_s3, %s1369_s5 }
 0x4d4   :  { %p1028_p7 = pnand %p1026_p6, %p1023_p5 }
 0x4d6   :  { %1031 = shalt.err (!%p1028_p7)
}
 0x4d7   :  { %796 = dma.vmem_to_hbm [thread:$0]  %s794_s26, 64, %s1369_s5, [#allocation3]   ;;  %vm783_vm3 = vcmask 0  }
 0x4d8   :  { %s1061_s10 = smov [#allocation4]  }
 0x4d9   :  { %s803_s11 = sshll.u32 %s1061_s10, 4  ;;  %s804_s11 = int_to_ptr.vmem [resolvable:$true] %s803_s11 }
 0x4da   :  { %s1032_s12 = scalar_lea.vmem %s804_s11, 16  ;;  %s1036_s13 = scalar_lea.vmem %s804_s11, 32 }
 0x4db   :  { %p1033_p8 = scmp.ne.s32.totalorder %s804_s11, %s1032_s12  ;;  %p1037_p9 = scmp.lt.s32.totalorder %s804_s11, %s804_s11 }
 0x4dc   :  { %p1038_p10 = scmp.lt.s32.totalorder %s1036_s13, %s1032_s12 }
 0x4de   :  { %p1039_p11 = por %p1038_p10, %p1037_p9 }
 0x4e0   :  { %p1040_p12 = pnand %p1039_p11, %p1033_p8 }
 0x548   :  { %v782_v33 = vpop.xlane.xlu0 %781 }
 0x549   :  { %784 = vst.msk [vmem:[#allocation4] sm:$0x1] %vm783_vm3, %v782_v33 }
 0x54a   :  { %1043 = shalt.err (!%p1040_p12)
}
 0x54b   :  { %s1044_s16 = scalar_lea.hbm %s1370_s6, 16 }
 0x54c   :  { %p1045_p13 = scmp.ne.s32.totalorder %s1370_s6, %s1044_s16  ;;  %p1048_p0 = scmp.lt.u32.totalorder %s1044_s16, %s1370_s6 }
 0x54e   :  { %p1050_p1 = pnand %p1048_p0, %p1045_p13 }
 0x550   :  { %1053 = shalt.err (!%p1050_p1)
}
 0x551   :  { %806 = dma.vmem_to_hbm [thread:$0]  %s804_s11, 16, %s1370_s6, [#allocation5]  }
 0x59e   :  { %v958_v47 = vpop.f32.mrb[6].mxu1 }
 0x59f   :  { %v773_v54 = vadd.f32 %v958_v47, %v1271_v13  ;;  %v750_v55 = vpop.f32.mrb[7].mxu1 }
 0x5a0   :  { %v772_v60 = vadd.f32 %v750_v55, %v1275_v16 }
 0x5a1   :  { %777 = vst.msk [vmem:[%s1368_s4 + $0x8] sm:$0xff] %vm30_vm1, %v773_v54 }
 0x5a2   :  { %776 = vst.msk [vmem:[%s1368_s4] sm:$0xff] %vm30_vm1, %v772_v60  ;;  %v961_v5 = vpop.f32.mrb[8].mxu1 }
 0x5a3   :  { %v775_v6 = vadd.f32 %v961_v5, %v1279_v19  ;;  %v760_v7 = vpop.f32.mrb[9].mxu1 }
 0x5a4   :  { %v774_v8 = vadd.f32 %v760_v7, %v1283_v57 }
 0x5a5   :  { %779 = vst.msk [vmem:[%s1368_s4 + $0x18] sm:$0xff] %vm30_vm1, %v775_v6 }
 0x5a6   :  { %778 = vst.msk [vmem:[%s1368_s4 + $0x10] sm:$0xff] %vm30_vm1, %v774_v8 }
 0x5a7   :  { %1054 = dma.done.wait [#allocation3], 64  }
 0x5a8   :  { %1055 = vsyncadd [#allocation3], 4294967232 }
 0x5a9   :  { %1056 = dma.done.wait [#allocation5], 16  }
 0x5aa   :  { %1057 = vsyncadd [#allocation5], 4294967280 }
 0x5ab   :  { %815 = vsyncpa [#allocation3], 1 }
 0x5ac   :  { %816 = vsyncpa [#allocation5], 1 }

</bundles_post_ra>
